<compile_context>
chip_gen: v7x
topology: tpu7x:2x2x1
jax: 0.10.0
libtpu: 0.0.40
codegen_flags: <defaults>
</compile_context>

<pallas_src>
from functools import partial

import jax
import jax.numpy as jnp
from jax.experimental import pallas as pl
from jax.experimental.pallas import tpu as pltpu

LATENT_DIM = 32      # latent_dim
D_HIDDEN = 128       # cfg.d_hidden
OUT_DIM = 784        # 28*28 MNIST pixels
BATCH = 8


def decoder_kernel(x_ref, w1_ref, b1_ref, w2_ref, b2_ref, o_ref):
    # h = ReLU(x @ W1 + b1)   (bf16 MXU inputs, f32 accumulation)
    xb = x_ref[...].astype(jnp.bfloat16)
    h = jnp.dot(xb, w1_ref[...], preferred_element_type=jnp.float32)
    h = jnp.maximum(h + b1_ref[...], 0.0)
    # y = Sigmoid(h @ W2 + b2)
    z = jnp.dot(h.astype(jnp.bfloat16), w2_ref[...],
                preferred_element_type=jnp.float32)
    z = z + b2_ref[...]
    # sigmoid(z) = 0.5 * tanh(0.5 * z) + 0.5  -> single EUP op, no inf path
    o_ref[...] = (0.5 * jnp.tanh(0.5 * z) + 0.5).astype(o_ref.dtype)


def prepare_params(w1, b1, w2, b2, weight_dtype=jnp.bfloat16, pad_to=128):
    """One-time parameter prep: pad W2/b2 out-features to a lane-dense width
    (multiple of `pad_to`, itself a multiple of 128) and cast weights to bf16.
    Do this at init, NOT per forward call."""
    assert pad_to % 128 == 0
    out_dim = w2.shape[1]
    pad = (-out_dim) % pad_to
    w1p = w1.astype(weight_dtype)
    b1p = b1.astype(jnp.float32)
    w2p = jnp.pad(w2, ((0, 0), (0, pad))).astype(weight_dtype)
    b2p = jnp.pad(b2, ((0, 0), (0, pad))).astype(jnp.float32)
    return w1p, b1p, w2p, b2p


@partial(jax.jit,
         static_argnames=("out_dim", "tm", "n_blocks", "out_dtype"))
def bernoulli_decoder(x, w1, b1, w2p, b2p, *, out_dim=OUT_DIM, tm=None,
                      n_blocks=1, out_dtype=jnp.float32):
    """x: (B, latent) f32; w1/w2p bf16, w2p pre-padded to a multiple of 128.

    Returns (B, out_dim) in `out_dtype`.

    tm:       batch tile (rows per grid step).  Default min(B, 256): matches
              the v6e/v7x MXU height; use 128 on v5e if batching heavily.
    n_blocks: output-feature blocks.  1 for v5e/v6e (single TC).  On v7x the
              batch grid axis already shards across the two TensorCores, so 1
              is the right default there too; an N-split (pad_to=1024,
              n_blocks=2) is only useful when B is tiny.
    """
    B, latent = x.shape
    d_hidden = w1.shape[1]
    n_pad = w2p.shape[1]

    assert n_pad % n_blocks == 0
    block_n = n_pad // n_blocks
    assert block_n == n_pad or block_n % 128 == 0

    # Batch tiling: full-dim block when B is small, else 256-row tiles.
    if tm is None:
        tm = B if B <= 256 else 256
    if tm >= B:
        tm = B
        b_pad = B
    else:
        assert tm % 8 == 0
        b_pad = pl.cdiv(B, tm) * tm
    if b_pad != B:
        x = jnp.pad(x, ((0, b_pad - B), (0, 0)))
    m_blocks = b_pad // tm

    cost = pl.CostEstimate(
        flops=2 * b_pad * (latent * d_hidden + d_hidden * n_pad),
        transcendentals=b_pad * n_pad,  # one tanh per output element
        bytes_accessed=(x.size * x.dtype.itemsize
                        + w1.size * w1.dtype.itemsize
                        + b1.size * b1.dtype.itemsize
                        + w2p.size * w2p.dtype.itemsize
                        + b2p.size * b2p.dtype.itemsize
                        + b_pad * n_pad * jnp.dtype(out_dtype).itemsize),
    )

    out = pl.pallas_call(
        decoder_kernel,
        out_shape=jax.ShapeDtypeStruct((b_pad, n_pad), out_dtype),
        grid_spec=pltpu.PrefetchScalarGridSpec(
            num_scalar_prefetch=0,
            grid=(m_blocks, n_blocks),
            in_specs=[
                pl.BlockSpec((tm, latent),         lambda i, j: (i, 0)),
                pl.BlockSpec((latent, d_hidden),   lambda i, j: (0, 0)),
                pl.BlockSpec((1, d_hidden),        lambda i, j: (0, 0)),
                pl.BlockSpec((d_hidden, block_n),  lambda i, j: (0, j)),
                pl.BlockSpec((1, block_n),         lambda i, j: (0, j)),
            ],
            out_specs=pl.BlockSpec((tm, block_n),  lambda i, j: (i, j)),
        ),
        compiler_params=pltpu.CompilerParams(
            dimension_semantics=("parallel", "parallel")),
        cost_estimate=cost,
    )(x, w1, b1, w2p, b2p)

    # Exact module semantics require (B, 784); this slice is tiny glue.
    # Callers that can consume the padded lane-dense slab should skip it.
    return out[:B, :out_dim]


def init_params(key):
    """Deterministic synthetic parameters (PyTorch Linear-style fan-in scaling)."""
    k1, k2, k3, k4 = jax.random.split(key, 4)
    s1 = 1.0 / jnp.sqrt(LATENT_DIM)
    s2 = 1.0 / jnp.sqrt(D_HIDDEN)
    w1 = jax.random.uniform(k1, (LATENT_DIM, D_HIDDEN), jnp.float32, -s1, s1)
    b1 = jax.random.uniform(k2, (1, D_HIDDEN), jnp.float32, -s1, s1)
    w2 = jax.random.uniform(k3, (D_HIDDEN, OUT_DIM), jnp.float32, -s2, s2)
    b2 = jax.random.uniform(k4, (1, OUT_DIM), jnp.float32, -s2, s2)
    return w1, b1, w2, b2


if __name__ == "__main__":
    key = jax.random.PRNGKey(0)
    kx, kp = jax.random.split(key)
    x = jax.random.normal(kx, (BATCH, LATENT_DIM), jnp.float32)
    w1, b1, w2, b2 = init_params(kp)

    # One-time prep (padding + bf16 cast) — NOT in the per-call hot path.
    w1p, b1p, w2p, b2p = prepare_params(w1, b1, w2, b2)

    y = bernoulli_decoder(x, w1p, b1p, w2p, b2p)
    y = jax.block_until_ready(y)
    assert y.shape == (BATCH, OUT_DIM)

    # Reference 1: same math as the kernel (bf16 weights, f32 accumulation).
    h_ref = jnp.maximum(
        jnp.dot(x.astype(jnp.bfloat16), w1p,
                preferred_element_type=jnp.float32) + b1p, 0.0)
    z_ref = jnp.dot(h_ref.astype(jnp.bfloat16), w2p,
                    preferred_element_type=jnp.float32) + b2p
    y_ref = jax.nn.sigmoid(z_ref)[:, :OUT_DIM]
    assert jnp.allclose(y, y_ref, atol=2e-3, rtol=0), \
        float(jnp.max(jnp.abs(y - y_ref)))

    # Reference 2: original full-f32 module math (loose tol for bf16 weights).
    y_f32 = jax.nn.sigmoid(jnp.maximum(x @ w1 + b1, 0.0) @ w2 + b2)
    assert jnp.allclose(y, y_f32, atol=3e-2), \
        float(jnp.max(jnp.abs(y - y_f32)))

    print("KERNEL_OK")
</pallas_src>

<mosaic_0001>
module attributes {stable_mosaic.version = 11 : i64} {
  func.func @decoder_kernel(%arg0: i32, %arg1: i32, %arg2: memref<8x32xf32, #tpu.memory_space<vmem>>, %arg3: memref<32x128xbf16, #tpu.memory_space<vmem>>, %arg4: memref<1x128xf32, #tpu.memory_space<vmem>>, %arg5: memref<128x896xbf16, #tpu.memory_space<vmem>>, %arg6: memref<1x896xf32, #tpu.memory_space<vmem>>, %arg7: memref<8x896xf32, #tpu.memory_space<vmem>>) attributes {dimension_semantics = [#tpu.dimension_semantics<parallel>, #tpu.dimension_semantics<parallel>], iteration_bounds = array<i64: 1, 1>, scalar_prefetch = 0 : i64, scratch_operands = 0 : i64, tpu.core_type = #tpu.core_type<tc>, window_params = [{transform_indices = @transform_0, window_bounds = array<i64: 8, 32>}, {pipeline_mode = #tpu.pipeline_mode<synchronous>, transform_indices = @transform_1, window_bounds = array<i64: 32, 128>}, {pipeline_mode = #tpu.pipeline_mode<synchronous>, transform_indices = @transform_2, window_bounds = array<i64: 1, 128>}, {transform_indices = @transform_3, window_bounds = array<i64: 128, 896>}, {transform_indices = @transform_4, window_bounds = array<i64: 1, 896>}, {transform_indices = @transform_5, window_bounds = array<i64: 8, 896>}]} {
    %c0 = arith.constant 0 : index
    %c0_0 = arith.constant 0 : index
    %0 = vector.load %arg2[%c0, %c0_0] : memref<8x32xf32, #tpu.memory_space<vmem>>, vector<8x32xf32>
    %1 = arith.truncf %0 : vector<8x32xf32> to vector<8x32xbf16>
    %c0_1 = arith.constant 0 : index
    %c0_2 = arith.constant 0 : index
    %2 = vector.load %arg3[%c0_1, %c0_2] : memref<32x128xbf16, #tpu.memory_space<vmem>>, vector<32x128xbf16>
    %cst = arith.constant dense<0.000000e+00> : vector<8x128xf32>
    %3 = tpu.matmul %1, %2, %cst {dimension_numbers = #tpu.dot_dimension_numbers<[1], [0], [0], [1], [0, 0, 1, 1], [], []>} : vector<8x32xbf16>, vector<32x128xbf16>, vector<8x128xf32> -> vector<8x128xf32>
    %c0_3 = arith.constant 0 : index
    %c0_4 = arith.constant 0 : index
    %4 = vector.load %arg4[%c0_3, %c0_4] : memref<1x128xf32, #tpu.memory_space<vmem>>, vector<1x128xf32>
    %5 = vector.broadcast %4 : vector<1x128xf32> to vector<8x128xf32>
    %6 = arith.addf %3, %5 : vector<8x128xf32>
    %cst_5 = arith.constant 0.000000e+00 : f32
    %7 = vector.broadcast %cst_5 : f32 to vector<8x128xf32>
    %8 = arith.maximumf %6, %7 : vector<8x128xf32>
    %9 = arith.truncf %8 : vector<8x128xf32> to vector<8x128xbf16>
    %c0_6 = arith.constant 0 : index
    %c0_7 = arith.constant 0 : index
    %10 = vector.load %arg5[%c0_6, %c0_7] : memref<128x896xbf16, #tpu.memory_space<vmem>>, vector<128x896xbf16>
    %cst_8 = arith.constant dense<0.000000e+00> : vector<8x896xf32>
    %11 = tpu.matmul %9, %10, %cst_8 {dimension_numbers = #tpu.dot_dimension_numbers<[1], [0], [0], [1], [0, 0, 1, 1], [], []>} : vector<8x128xbf16>, vector<128x896xbf16>, vector<8x896xf32> -> vector<8x896xf32>
    %c0_9 = arith.constant 0 : index
    %c0_10 = arith.constant 0 : index
    %12 = vector.load %arg6[%c0_9, %c0_10] : memref<1x896xf32, #tpu.memory_space<vmem>>, vector<1x896xf32>
    %13 = vector.broadcast %12 : vector<1x896xf32> to vector<8x896xf32>
    %14 = arith.addf %11, %13 : vector<8x896xf32>
    %cst_11 = arith.constant 5.000000e-01 : f32
    %15 = vector.broadcast %cst_11 : f32 to vector<8x896xf32>
    %16 = arith.mulf %15, %14 : vector<8x896xf32>
    %17 = math.tanh %16 : vector<8x896xf32>
    %cst_12 = arith.constant 5.000000e-01 : f32
    %18 = vector.broadcast %cst_12 : f32 to vector<8x896xf32>
    %19 = arith.mulf %18, %17 : vector<8x896xf32>
    %cst_13 = arith.constant 5.000000e-01 : f32
    %20 = vector.broadcast %cst_13 : f32 to vector<8x896xf32>
    %21 = arith.addf %19, %20 : vector<8x896xf32>
    %c0_14 = arith.constant 0 : index
    %c0_15 = arith.constant 0 : index
    %22 = vector.load %arg7[%c0_14, %c0_15] : memref<8x896xf32, #tpu.memory_space<vmem>>, vector<8x896xf32>
    tpu.vector_store %arg7[%c0_14, %c0_15], %21 {strides = array<i32>} : memref<8x896xf32, #tpu.memory_space<vmem>>, vector<8x896xf32>,
    return
  }
  func.func @transform_0(%arg0: i32, %arg1: i32) -> (i32, i32) {
    %c0_i32 = arith.constant 0 : i32
    %c0_i32_0 = arith.constant 0 : i32
    return %arg0, %c0_i32 : i32, i32
  }
  func.func @transform_1(%arg0: i32, %arg1: i32) -> (i32, i32) {
    %c0_i32 = arith.constant 0 : i32
    %c0_i32_0 = arith.constant 0 : i32
    %c0_i32_1 = arith.constant 0 : i32
    return %c0_i32, %c0_i32_0 : i32, i32
  }
  func.func @transform_2(%arg0: i32, %arg1: i32) -> (i32, i32) {
    %c0_i32 = arith.constant 0 : i32
    %c0_i32_0 = arith.constant 0 : i32
    %c0_i32_1 = arith.constant 0 : i32
    return %c0_i32, %c0_i32_0 : i32, i32
  }
  func.func @transform_3(%arg0: i32, %arg1: i32) -> (i32, i32) {
    %c0_i32 = arith.constant 0 : i32
    %c0_i32_0 = arith.constant 0 : i32
    return %c0_i32, %arg1 : i32, i32
  }
  func.func @transform_4(%arg0: i32, %arg1: i32) -> (i32, i32) {
    %c0_i32 = arith.constant 0 : i32
    %c0_i32_0 = arith.constant 0 : i32
    return %c0_i32, %arg1 : i32, i32
  }
  func.func @transform_5(%arg0: i32, %arg1: i32) -> (i32, i32) {
    %c0_i32 = arith.constant 0 : i32
    return %arg0, %arg1 : i32, i32
  }
}

</mosaic_0001>

<bundles_post_ra>
// kernel: bernoulli_decoder.1
= control target key start
LH: loop header
LB: loop body
LE: loop exit
PB: predicated region body
PF: predicated region fallthrough
CT: control target
= control target key end

     0   :  { %10 = vsyncpa [#allocation3], 0  ;;  %s1145_s0 = inlined_call_operand.hbm [shape: f32[8,32], index: 0, kind: input, shape index: {}]   ;;  %s1146_s1 = inlined_call_operand.hbm [shape: bf16[32,128], index: 1, kind: input, shape index: {}]   ;;  %s1147_s2 = inlined_call_operand.vmem [shape: f32[1,128], index: 2, kind: input, shape index: {}]   ;;  %s1148_s3 = inlined_call_operand.hbm [shape: bf16[128,896], index: 3, kind: input, shape index: {}]   ;;  %s1149_s4 = inlined_call_operand.vmem [shape: f32[1,896], index: 4, kind: input, shape index: {}]   ;;  %s1150_s5 = inlined_call_operand.hbm [shape: f32[8,896], index: 5, kind: output, shape index: {}]  }
   0x1   :  { %11 = vsyncpa [#allocation6], 0 }
   0x2   :  { %12 = vsyncpa [#allocation4], 0  ;;  %s1036_s18 = smov [#allocation5]   ;;  %s942_s22 = scalar_lea.hbm %s1146_s1, 256 }
   0x3   :  { %s28_s19 = sshll.u32 %s1036_s18, 4  ;;  %p943_p0 = scmp.ne.s32.totalorder %s1146_s1, %s942_s22  ;;  %s29_s19 = int_to_ptr.vmem [resolvable:$true] %s28_s19 }
   0x4   :  { %p946_p1 = scmp.lt.u32.totalorder %s942_s22, %s1146_s1 }
   0x6   :  { %p948_p2 = pnand %p946_p1, %p943_p0 }
   0x8   :  { %951 = shalt.err (!%p948_p2)
}
   0x9   :  { %s952_s27 = scalar_lea.vmem %s29_s19, 256  ;;  %p957_p4 = scmp.lt.s32.totalorder %s29_s19, %s29_s19 }
   0xa   :  { %p953_p3 = scmp.ne.s32.totalorder %s29_s19, %s952_s27  ;;  %p958_p5 = scmp.lt.s32.totalorder %s952_s27, %s952_s27 }
   0xc   :  { %p959_p6 = por %p958_p5, %p957_p4 }
   0xe   :  { %p960_p7 = pnand %p959_p6, %p953_p3 }
  0x10   :  { %963 = shalt.err (!%p960_p7)
}
  0x11   :  { %s1037_s28 = smov 64   ;;  %s1038_s29 = smov 4  }
  0x12   :  { %34 = dma.hbm_to_vmem [thread:$0]  %s1146_s1, 256, %s29_s19, [#allocation6], %s1037_s28, %s1037_s28, %s1038_s29  }
  0x13   :  { %s1039_s7 = smov [#allocation2]   ;;  %s1040_s9 = smov [#allocation7]  }
  0x14   :  { %s19_s8 = sshll.u32 %s1039_s7, 4  ;;  %s42_s10 = sshll.u32 %s1040_s9, 4  ;;  %s20_s8 = int_to_ptr.vmem [resolvable:$true] %s19_s8  ;;  %s43_s10 = int_to_ptr.vmem [resolvable:$true] %s42_s10 }
  0x15   :  { %s964_s13 = scalar_lea.hbm %s1145_s0, 128 }
  0x16   :  { %p965_p8 = scmp.ne.s32.totalorder %s1145_s0, %s964_s13  ;;  %p968_p9 = scmp.lt.u32.totalorder %s964_s13, %s1145_s0 }
  0x18   :  { %p970_p10 = pnand %p968_p9, %p965_p8 }
  0x1a   :  { %973 = shalt.err (!%p970_p10)
}
  0x1b   :  { %s974_s1 = scalar_lea.vmem %s20_s8, 128  ;;  %p979_p12 = scmp.lt.s32.totalorder %s20_s8, %s20_s8 }
  0x1c   :  { %p975_p11 = scmp.ne.s32.totalorder %s20_s8, %s974_s1  ;;  %p980_p13 = scmp.lt.s32.totalorder %s974_s1, %s974_s1 }
  0x1e   :  { %p981_p0 = por %p980_p13, %p979_p12 }
  0x20   :  { %p982_p1 = pnand %p981_p0, %p975_p11 }
  0x22   :  { %985 = shalt.err (!%p982_p1)
}
  0x23   :  { %22 = dma.hbm_to_vmem [thread:$0]  %s1145_s0, 128, %s20_s8, [#allocation3]  }
  0x24   :  { %s986_s22 = scalar_lea.hbm %s1148_s3, 7168 }
  0x25   :  { %p987_p2 = scmp.ne.s32.totalorder %s1148_s3, %s986_s22  ;;  %p990_p3 = scmp.lt.u32.totalorder %s986_s22, %s1148_s3 }
  0x27   :  { %p992_p4 = pnand %p990_p3, %p987_p2 }
  0x29   :  { %995 = shalt.err (!%p992_p4)
}
  0x2a   :  { %s996_s27 = scalar_lea.vmem %s43_s10, 7168  ;;  %p1001_p6 = scmp.lt.s32.totalorder %s43_s10, %s43_s10 }
  0x2b   :  { %p997_p5 = scmp.ne.s32.totalorder %s43_s10, %s996_s27  ;;  %p1002_p7 = scmp.lt.s32.totalorder %s996_s27, %s996_s27 }
  0x2d   :  { %p1003_p8 = por %p1002_p7, %p1001_p6 }
  0x2f   :  { %p1004_p9 = pnand %p1003_p8, %p997_p5 }
  0x31   :  { %1007 = shalt.err (!%p1004_p9)
}
  0x32   :  { %s1041_s0 = smov 448   ;;  %s1042_s28 = smov 28  }
  0x33   :  { %48 = dma.hbm_to_vmem [thread:$0]  %s1148_s3, 7168, %s43_s10, [#allocation6], %s1041_s0, %s1041_s0, %s1042_s28  }
  0x34   :  { %1030 = dma.done.wait [#allocation3], 128  }
  0x35   :  { %1031 = vsyncadd [#allocation3], 4294967168 }
  0x36   :  { %1032 = dma.done.wait [#allocation6], 7424  }
  0x37   :  { %1033 = vsyncadd [#allocation6], 4294959872  ;;  %v1043_v0 = vmov 0.0   ;;  %vm1044_vm0 = vmmov 0   ;;  %v846_v1 = vld [vmem:[#allocation5] sm:$0xff]   ;;  %v847_v2 = vld [vmem:[#allocation5 + $0x8] sm:$0xff]  }
  0x38   :  { %807 = vmatprep.subr.bf16.mxu0 %v1043_v0  ;;  %811 = vmatprep.mubr.msk.bf16.mxu0 %vm1044_vm0, %v1043_v0  ;;  %v61_v3 = vld [vmem:[#allocation2] sm:$0xff]  ;;  %v848_v4 = vld [vmem:[#allocation7 + $0x4] ss:$28 sps:$4 sm:$0xff]   ;;  %v854_v8 = vld [vmem:[#allocation7 + $0x3c] ss:$28 sps:$4 sm:$0xff]   ;;  %vm86_vm1 = vcmask 261120  }
  0x39   :  { %808 = vmatpush3.bf16.msra.mxu0 %v846_v1  ;;  %v852_v5 = vld [vmem:[#allocation7 + $0xc] ss:$28 sps:$4 sm:$0xff]   ;;  %v853_v6 = vld [vmem:[#allocation7] ss:$28 sps:$4 sm:$0xff]   ;;  %v62_v7 = vpack.c.bf16 %v61_v3, %v61_v3  ;;  %521 = vmatprep.subr.bf16.mxu1 %v848_v4  ;;  %v859_v11 = vld [vmem:[#allocation7 + $0x38] ss:$28 sps:$4 sm:$0xff]  }
  0x3a   :  { %809 = vmatprep.subr.bf16.mxu0 %v1043_v0  ;;  %v850_v9 = vld [vmem:[#allocation7 + $0x8] ss:$28 sps:$4 sm:$0xff]   ;;  %522 = vmatpush1.bf16.msra.mxu1 %v853_v6  ;;  %v860_v12 = vld [vmem:[#allocation7 + $0x74] ss:$28 sps:$4 sm:$0xff]   ;;  %v856_v13 = vld [vmem:[#allocation7 + $0x40] ss:$28 sps:$4 sm:$0xff]  }
  0x3b   :  { %523 = vmatprep.subr.bf16.mxu1 %v854_v8  ;;  %v858_v10 = vld [vmem:[#allocation7 + $0x44] ss:$28 sps:$4 sm:$0xff]   ;;  %v864_v14 = vld [vmem:[#allocation7 + $0x7c] ss:$28 sps:$4 sm:$0xff]   ;;  %v865_v15 = vld [vmem:[#allocation7 + $0x70] ss:$28 sps:$4 sm:$0xff]  }
  0x3c   :  { %v866_v16 = vld [vmem:[#allocation7 + $0xac] ss:$28 sps:$4 sm:$0xff]   ;;  %v862_v17 = vld [vmem:[#allocation7 + $0x78] ss:$28 sps:$4 sm:$0xff]   ;;  %v872_v20 = vld [vmem:[#allocation7 + $0xe4] ss:$28 sps:$4 sm:$0xff]  }
  0x3d   :  { %810 = vmatpush3.bf16.msra.mxu0 %v847_v2  ;;  %v871_v18 = vld [vmem:[#allocation7 + $0xa8] ss:$28 sps:$4 sm:$0xff]   ;;  %v870_v19 = vld [vmem:[#allocation7 + $0xb4] ss:$28 sps:$4 sm:$0xff]   ;;  %v877_v23 = vld [vmem:[#allocation7 + $0xe0] ss:$28 sps:$4 sm:$0xff]  }
  0x3e   :  { %562 = vmatprep.subr.bf16.mxu0 %v852_v5  ;;  %524 = vmatpush1.bf16.msra.mxu1 %v859_v11  ;;  %v868_v21 = vld [vmem:[#allocation7 + $0xb0] ss:$28 sps:$4 sm:$0xff]   ;;  %v878_v24 = vld [vmem:[#allocation7 + $0x11c] ss:$28 sps:$4 sm:$0xff]   ;;  %v874_v25 = vld [vmem:[#allocation7 + $0xe8] ss:$28 sps:$4 sm:$0xff]  }
  0x3f   :  { %525 = vmatprep.subr.bf16.mxu1 %v860_v12  ;;  %v876_v22 = vld [vmem:[#allocation7 + $0xec] ss:$28 sps:$4 sm:$0xff]   ;;  %v883_v26 = vld [vmem:[#allocation7 + $0x118] ss:$28 sps:$4 sm:$0xff]   ;;  %v882_v27 = vld [vmem:[#allocation7 + $0x124] ss:$28 sps:$4 sm:$0xff]  }
  0x40   :  { %812 = vmatmul.mubr.msk.bf16.vlgmr.msra.gmra.mrb[0].mxu0 %vm86_vm1, %v62_v7  ;;  %v884_v28 = vld [vmem:[#allocation7 + $0x154] ss:$28 sps:$4 sm:$0xff]   ;;  %v880_v29 = vld [vmem:[#allocation7 + $0x120] ss:$28 sps:$4 sm:$0xff]   ;;  %v890_v33 = vld [vmem:[#allocation7 + $0x18c] ss:$28 sps:$4 sm:$0xff]   ;;  %v198_v7 = vlaneseq }
  0x41   :  { %563 = vmatpush1.bf16.msra.mxu0 %v850_v9  ;;  %v889_v30 = vld [vmem:[#allocation7 + $0x150] ss:$28 sps:$4 sm:$0xff]   ;;  %v888_v31 = vld [vmem:[#allocation7 + $0x15c] ss:$28 sps:$4 sm:$0xff]   ;;  %v895_v36 = vld [vmem:[#allocation7 + $0x188] ss:$28 sps:$4 sm:$0xff]  }
  0x42   :  { %564 = vmatprep.subr.bf16.mxu0 %v858_v10  ;;  %526 = vmatpush1.bf16.msra.mxu1 %v865_v15  ;;  %v886_v32 = vld [vmem:[#allocation7 + $0x158] ss:$28 sps:$4 sm:$0xff]   ;;  %v892_v35 = vld [vmem:[#allocation7 + $0x190] ss:$28 sps:$4 sm:$0xff]   ;;  %v1045_v38 = vmov 0   ;;  %v199_v8 = vshrl.u32 %v198_v7, 7 }
  0x43   :  { %527 = vmatprep.subr.bf16.mxu1 %v866_v16  ;;  %v894_v34 = vld [vmem:[#allocation7 + $0x194] ss:$28 sps:$4 sm:$0xff]   ;;  %553 = vmatprep.mubr.bf16.mxu1 %v1045_v38  ;;  %v735_v39 = vld [vmem:[%s1147_s2] ss:$0 sm:$0xff]  ;;  %v906_v52 = vld [vmem:[#allocation7 + $0x84] ss:$28 sps:$4 sm:$0xff]  }
  0x44   :  { %v898_v37 = vld [vmem:[#allocation7 + $0x14] ss:$28 sps:$4 sm:$0xff]   ;;  %594 = vmatprep.mubr.bf16.mxu0 %v1045_v38  ;;  %v902_v49 = vld [vmem:[#allocation7 + $0x4c] ss:$28 sps:$4 sm:$0xff]   ;;  %v904_v53 = vld [vmem:[#allocation7 + $0x80] ss:$28 sps:$4 sm:$0xff]  }
  0x45   :  { %565 = vmatpush1.bf16.msra.mxu0 %v856_v13  ;;  %v896_v46 = vld [vmem:[#allocation7 + $0x10] ss:$28 sps:$4 sm:$0xff]   ;;  %v899_v47 = vld [vmem:[#allocation7 + $0x18] ss:$28 sps:$4 sm:$0xff]   ;;  %v900_v50 = vld [vmem:[#allocation7 + $0x48] ss:$28 sps:$4 sm:$0xff]  }
  0x46   :  { %566 = vmatprep.subr.bf16.mxu0 %v864_v14  ;;  %528 = vmatpush1.bf16.msra.mxu1 %v871_v18  ;;  %v903_v51 = vld [vmem:[#allocation7 + $0x50] ss:$28 sps:$4 sm:$0xff]   ;;  %v907_v54 = vld [vmem:[#allocation7 + $0x88] ss:$28 sps:$4 sm:$0xff]   ;;  %v910_v55 = vld [vmem:[#allocation7 + $0xbc] ss:$28 sps:$4 sm:$0xff]  }
  0x47   :  { %529 = vmatprep.subr.bf16.mxu1 %v872_v20  ;;  %v908_v56 = vld [vmem:[#allocation7 + $0xb8] ss:$28 sps:$4 sm:$0xff]   ;;  %v911_v57 = vld [vmem:[#allocation7 + $0xc0] ss:$28 sps:$4 sm:$0xff]   ;;  %v912_v59 = vld [vmem:[#allocation7 + $0xf0] ss:$28 sps:$4 sm:$0xff]  }
  0x48   :  { %v914_v58 = vld [vmem:[#allocation7 + $0xf4] ss:$28 sps:$4 sm:$0xff]   ;;  %v918_v61 = vld [vmem:[#allocation7 + $0x12c] ss:$28 sps:$4 sm:$0xff]   ;;  %v922_v1 = vld [vmem:[#allocation7 + $0x164] ss:$28 sps:$4 sm:$0xff]  }
  0x49   :  { %567 = vmatpush1.bf16.msra.mxu0 %v862_v17  ;;  %v915_v60 = vld [vmem:[#allocation7 + $0xf8] ss:$28 sps:$4 sm:$0xff]   ;;  %v916_v62 = vld [vmem:[#allocation7 + $0x128] ss:$28 sps:$4 sm:$0xff]   ;;  %v919_v63 = vld [vmem:[#allocation7 + $0x130] ss:$28 sps:$4 sm:$0xff]  }
  0x4a   :  { %568 = vmatprep.subr.bf16.mxu0 %v870_v19  ;;  %530 = vmatpush1.bf16.msra.mxu1 %v877_v23  ;;  %v920_v2 = vld [vmem:[#allocation7 + $0x160] ss:$28 sps:$4 sm:$0xff]   ;;  %v923_v3 = vld [vmem:[#allocation7 + $0x168] ss:$28 sps:$4 sm:$0xff]   ;;  %v924_v5 = vld [vmem:[#allocation7 + $0x198] ss:$28 sps:$4 sm:$0xff]  }
  0x4b   :  { %531 = vmatprep.subr.bf16.mxu1 %v878_v24  ;;  %v926_v4 = vld [vmem:[#allocation7 + $0x19c] ss:$28 sps:$4 sm:$0xff]   ;;  %v200_v9 = vsub.s32 0, %v199_v8  ;;  %v208_v10 = vsub.s32 2, %v199_v8  ;;  %v196_v11 = vld [vmem:[%s1149_s4] sm:$0xff]  ;;  %v204_v12 = vsub.s32 1, %v199_v8 }
  0x4c   :  { %v927_v6 = vld [vmem:[#allocation7 + $0x1a0] ss:$28 sps:$4 sm:$0xff]   ;;  %v212_v13 = vsub.s32 3, %v199_v8  ;;  %s1046_s4 = smov [#allocation8]  }
  0x4d   :  { %569 = vmatpush1.bf16.msra.mxu0 %v868_v21  ;;  %v201_v14 = vrot.slane %v196_v11, %v200_v9  ;;  %v209_v15 = vrot.slane %v196_v11, %v208_v10  ;;  %v205_v16 = vrot.slane %v196_v11, %v204_v12  ;;  %s725_s8 = sshll.u32 %s1046_s4, 4  ;;  %s726_s8 = int_to_ptr.vmem [resolvable:$true] %s725_s8 }
  0x4e   :  { %570 = vmatprep.subr.bf16.mxu0 %v876_v22  ;;  %532 = vmatpush1.bf16.msra.mxu1 %v883_v26  ;;  %v213_v17 = vrot.slane %v196_v11, %v212_v13  ;;  %s1008_s9 = scalar_lea.vmem %s726_s8, 896  ;;  %p1013_p11 = scmp.lt.s32.totalorder %s726_s8, %s726_s8 }
  0x4f   :  { %533 = vmatprep.subr.bf16.mxu1 %v884_v28  ;;  %p1009_p10 = scmp.ne.s32.totalorder %s726_s8, %s1008_s9  ;;  %p1014_p12 = scmp.lt.s32.totalorder %s1008_s9, %s1008_s9 }
  0x51   :  { %571 = vmatpush1.bf16.msra.mxu0 %v874_v25  ;;  %p1015_p13 = por %p1014_p12, %p1013_p11 }
  0x52   :  { %572 = vmatprep.subr.bf16.mxu0 %v882_v27  ;;  %534 = vmatpush1.bf16.msra.mxu1 %v889_v30 }
  0x53   :  { %535 = vmatprep.subr.bf16.mxu1 %v890_v33  ;;  %p1016_p0 = pnand %p1015_p13, %p1009_p10 }
  0x55   :  { %573 = vmatpush1.bf16.msra.mxu0 %v880_v29 }
  0x56   :  { %574 = vmatprep.subr.bf16.mxu0 %v888_v31  ;;  %536 = vmatpush1.bf16.msra.mxu1 %v895_v36 }
  0x57   :  { %603 = vmatprep.subr.bf16.mxu1 %v898_v37 }
  0x59   :  { %575 = vmatpush1.bf16.msra.mxu0 %v886_v32 }
  0x5a   :  { %576 = vmatprep.subr.bf16.mxu0 %v894_v34 }
  0x5d   :  { %577 = vmatpush1.bf16.msra.mxu0 %v892_v35 }
  0x5e   :  { %815 = vmatprep.subr.bf16.mxu0 %v1043_v0 }
 0x113   :  { %v124_v40 = vpop.f32.mrb[0].mxu0 }
 0x114   :  { %v125_v41 = vadd.f32 %v735_v39, %v124_v40  ;;  %v813_v42 = vpop.f32.mrb[1].mxu0 }
 0x115   :  { %v127_v43 = vpop.f32.mrb[2].mxu0 }
 0x116   :  { %v130_v44 = vmax.f32 %v125_v41, 0.0  ;;  %v814_v45 = vpop.f32.mrb[3].mxu0 }
 0x117   :  { %v216_v45 = vsub.s32 4, %v199_v8 }
 0x118   :  { %v131_v48 = vpack.c.bf16 %v130_v44, %v130_v44 }
 0x11a   :  { %554 = vmatmul.mubr.bf16.vlgmr.msra.gmra.mrb[0].mxu1 %v131_v48  ;;  %595 = vmatmul.mubr.bf16.vlgmr.msra.gmra.mrb[4].mxu0 %v131_v48 }
 0x11b   :  { %604 = vmatpush1.bf16.msra.mxu1 %v896_v46  ;;  %816 = vmatpush3.bf16.msra.mxu0 %v899_v47  ;;  %v224_v46 = vsub.s32 6, %v199_v8  ;;  %v220_v47 = vsub.s32 5, %v199_v8 }
 0x11c   :  { %605 = vmatprep.subr.bf16.mxu1 %v902_v49  ;;  %817 = vmatprep.subr.bf16.mxu0 %v1043_v0 }
 0x11d   :  { %635 = vmatprep.mubr.bf16.mxu1 %v1045_v38  ;;  %831 = vmatprep.mubr.msk.bf16.mxu0 %vm1044_vm0, %v1043_v0  ;;  %v225_v49 = vrot.slane %v196_v11, %v224_v46 }
 0x11f   :  { %606 = vmatpush1.bf16.msra.mxu1 %v900_v50  ;;  %818 = vmatpush3.bf16.msra.mxu0 %v903_v51  ;;  %v221_v50 = vrot.slane %v196_v11, %v220_v47 }
 0x120   :  { %607 = vmatprep.subr.bf16.mxu1 %v906_v52  ;;  %819 = vmatprep.subr.bf16.mxu0 %v1043_v0 }
 0x123   :  { %608 = vmatpush1.bf16.msra.mxu1 %v904_v53  ;;  %820 = vmatpush3.bf16.msra.mxu0 %v907_v54 }
 0x124   :  { %609 = vmatprep.subr.bf16.mxu1 %v910_v55  ;;  %821 = vmatprep.subr.bf16.mxu0 %v1043_v0 }
 0x127   :  { %610 = vmatpush1.bf16.msra.mxu1 %v908_v56  ;;  %822 = vmatpush3.bf16.msra.mxu0 %v911_v57 }
 0x128   :  { %611 = vmatprep.subr.bf16.mxu1 %v914_v58  ;;  %823 = vmatprep.subr.bf16.mxu0 %v1043_v0 }
 0x12b   :  { %612 = vmatpush1.bf16.msra.mxu1 %v912_v59  ;;  %824 = vmatpush3.bf16.msra.mxu0 %v915_v60 }
 0x12c   :  { %613 = vmatprep.subr.bf16.mxu1 %v918_v61  ;;  %825 = vmatprep.subr.bf16.mxu0 %v1043_v0 }
 0x12f   :  { %614 = vmatpush1.bf16.msra.mxu1 %v916_v62  ;;  %826 = vmatpush3.bf16.msra.mxu0 %v919_v63 }
 0x130   :  { %615 = vmatprep.subr.bf16.mxu1 %v922_v1  ;;  %827 = vmatprep.subr.bf16.mxu0 %v1043_v0 }
 0x133   :  { %616 = vmatpush1.bf16.msra.mxu1 %v920_v2  ;;  %828 = vmatpush3.bf16.msra.mxu0 %v923_v3 }
 0x134   :  { %617 = vmatprep.subr.bf16.mxu1 %v926_v4  ;;  %829 = vmatprep.subr.bf16.mxu0 %v1043_v0 }
 0x137   :  { %618 = vmatpush1.bf16.msra.mxu1 %v924_v5  ;;  %830 = vmatpush3.bf16.msra.mxu0 %v927_v6 }
 0x13a   :  { %636 = vmatmul.mubr.bf16.vlgmr.msra.gmra.mrb[4].mxu1 %v131_v48  ;;  %832 = vmatmul.mubr.bf16.vlgmr.msra.gmra.mrb[8].mxu0 %v131_v48  ;;  %v217_v48 = vrot.slane %v196_v11, %v216_v45 }
 0x1ed   :  { %v555_v18 = vpop.f32.mrb[0].mxu1  ;;  %v596_v0 = vpop.f32.mrb[4].mxu0 }
 0x1ee   :  { %v556_v19 = vadd.f32 %v555_v18, %v201_v14  ;;  %v597_v20 = vadd.f32 %v596_v0, %v209_v15  ;;  %v557_v21 = vpop.f32.mrb[1].mxu1  ;;  %v598_v22 = vpop.f32.mrb[5].mxu0 }
 0x1ef   :  { %v558_v23 = vadd.f32 %v557_v21, %v205_v16  ;;  %v599_v24 = vadd.f32 %v598_v22, %v213_v17  ;;  %v559_v25 = vpop.f32.mrb[2].mxu1  ;;  %v600_v26 = vpop.f32.mrb[6].mxu0 }
 0x1f0   :  { %v684_v27 = vmul.f32 0.5, %v556_v19  ;;  %v686_v28 = vmul.f32 0.5, %v597_v20  ;;  %v560_v29 = vpop.f32.mrb[3].mxu1  ;;  %v601_v30 = vpop.f32.mrb[7].mxu0 }
 0x1f1   :  { %v685_v31 = vmul.f32 0.5, %v558_v23  ;;  %v687_v32 = vmul.f32 0.5, %v599_v24 }
 0x1f2   :  { %928 = vtanh.f32 %v684_v27 }
 0x1f3   :  { %930 = vtanh.f32 %v686_v28 }
 0x1f4   :  { %932 = vtanh.f32 %v685_v31 }
 0x1f5   :  { %934 = vtanh.f32 %v687_v32 }
 0x1fc   :  { %v929_v33 = vpop.eup %928 }
 0x1fd   :  { %v931_v34 = vpop.eup %930  ;;  %v698_v35 = vmul.f32 0.5, %v929_v33 }
 0x1fe   :  { %v933_v36 = vpop.eup %932  ;;  %v700_v37 = vmul.f32 0.5, %v931_v34 }
 0x1ff   :  { %v935_v38 = vpop.eup %934  ;;  %v705_v39 = vadd.f32 0.5, %v698_v35  ;;  %v699_v40 = vmul.f32 0.5, %v933_v36 }
 0x200   :  { %v707_v41 = vadd.f32 0.5, %v700_v37  ;;  %v701_v42 = vmul.f32 0.5, %v935_v38 }
 0x201   :  { %712 = vst [vmem:[#allocation8] sm:$0xff] %v705_v39  ;;  %v706_v43 = vadd.f32 0.5, %v699_v40 }
 0x202   :  { %714 = vst [vmem:[#allocation8 + $0x10] sm:$0xff] %v707_v41  ;;  %v708_v44 = vadd.f32 0.5, %v701_v42 }
 0x203   :  { %713 = vst [vmem:[#allocation8 + $0x8] sm:$0xff] %v706_v43 }
 0x204   :  { %715 = vst [vmem:[#allocation8 + $0x18] sm:$0xff] %v708_v44 }
 0x20d   :  { %v637_v51 = vpop.f32.mrb[4].mxu1  ;;  %v678_v52 = vpop.f32.mrb[8].mxu0 }
 0x20e   :  { %v638_v53 = vadd.f32 %v637_v51, %v217_v48  ;;  %v679_v54 = vadd.f32 %v678_v52, %v225_v49  ;;  %v639_v55 = vpop.f32.mrb[5].mxu1  ;;  %v833_v56 = vpop.f32.mrb[9].mxu0 }
 0x20f   :  { %v640_v57 = vadd.f32 %v639_v55, %v221_v50  ;;  %v641_v58 = vpop.f32.mrb[6].mxu1  ;;  %v681_v59 = vpop.f32.mrb[10].mxu0 }
 0x210   :  { %v688_v60 = vmul.f32 0.5, %v638_v53  ;;  %v690_v61 = vmul.f32 0.5, %v679_v54  ;;  %v642_v62 = vpop.f32.mrb[7].mxu1  ;;  %v834_v63 = vpop.f32.mrb[11].mxu0 }
 0x211   :  { %v689_v1 = vmul.f32 0.5, %v640_v57 }
 0x212   :  { %936 = vtanh.f32 %v688_v60 }
 0x213   :  { %938 = vtanh.f32 %v690_v61 }
 0x214   :  { %940 = vtanh.f32 %v689_v1 }
 0x21c   :  { %v937_v2 = vpop.eup %936 }
 0x21d   :  { %v939_v3 = vpop.eup %938  ;;  %v702_v4 = vmul.f32 0.5, %v937_v2 }
 0x21e   :  { %v941_v5 = vpop.eup %940  ;;  %v704_v6 = vmul.f32 0.5, %v939_v3 }
 0x21f   :  { %v709_v7 = vadd.f32 0.5, %v702_v4  ;;  %v703_v8 = vmul.f32 0.5, %v941_v5 }
 0x220   :  { %v711_v9 = vadd.f32 0.5, %v704_v6 }
 0x221   :  { %716 = vst [vmem:[#allocation8 + $0x20] sm:$0xff] %v709_v7  ;;  %v710_v10 = vadd.f32 0.5, %v703_v8 }
 0x222   :  { %718 = vst [vmem:[#allocation8 + $0x30] sm:$0xff] %v711_v9 }
 0x223   :  { %717 = vst [vmem:[#allocation8 + $0x28] sm:$0xff] %v710_v10 }
 0x224   :  { %1019 = shalt.err (!%p1016_p0)
}
 0x225   :  { %s1020_s12 = scalar_lea.hbm %s1150_s5, 896 }
 0x226   :  { %p1021_p1 = scmp.ne.s32.totalorder %s1150_s5, %s1020_s12  ;;  %p1024_p2 = scmp.lt.u32.totalorder %s1020_s12, %s1150_s5 }
 0x228   :  { %p1026_p3 = pnand %p1024_p2, %p1021_p1 }
 0x22a   :  { %1029 = shalt.err (!%p1026_p3)
}
 0x22b   :  { %728 = dma.vmem_to_hbm [thread:$0]  %s726_s8, 896, %s1150_s5, [#allocation4]  }
 0x22c   :  { %1034 = dma.done.wait [#allocation4], 896  }
 0x22d   :  { %1035 = vsyncadd [#allocation4], 4294966400 }
 0x22e   :  { %732 = vsyncpa [#allocation3], 1 }
 0x22f   :  { %733 = vsyncpa [#allocation6], 1 }
 0x230   :  { %734 = vsyncpa [#allocation4], 1 }

</bundles_post_ra>
